<compile_context>
chip_gen: v6e
topology: v6e:2x2x1
jax: 0.10.0
libtpu: 0.0.40
codegen_flags: <defaults>
</compile_context>

<pallas_src>
import functools

import jax
import jax.numpy as jnp
from jax.experimental import pallas as pl
from jax.experimental.pallas import tpu as pltpu

_LANES = 128
# Cap on the number of unrolled 128-lane VPU adds per grid step (128 groups).
_MAX_BLOCK_LANES = 16384


def _classifier_kernel(x_ref, w_ref, b_ref, o_ref, acc_ref, *, inv_hw):
    # x_ref:   (TB, C, T_HW)  activation block (streamed along last grid axis)
    # w_ref:   (C, N_pad)     transposed, zero-padded weight (f32)
    # b_ref:   (1, N_pad)     zero-padded bias (f32)
    # o_ref:   (TB, N_pad)    output block (resident across the HW axis)
    # acc_ref: (TB, C, 128)   f32 lane-partial accumulator (VPU adds only)
    k = pl.program_id(1)

    @pl.when(k == 0)
    def _init():
        acc_ref[...] = jnp.zeros_like(acc_ref)

    x = x_ref[...].astype(jnp.float32)          # cast only this block
    t_hw = x.shape[-1]
    n_groups = t_hw // _LANES
    rem = t_hw - n_groups * _LANES

    # Elementwise (VPU-only) accumulation of 128-lane groups.  The expensive
    # cross-lane (XLU) reduce is deferred to the epilogue so it runs once per
    # batch tile instead of once per HW tile.
    part = acc_ref[...]
    for g in range(n_groups):
        part = part + x[:, :, g * _LANES:(g + 1) * _LANES]
    if rem:
        # Only reachable on the single-step full-extent path (HW % 128 != 0):
        # reduce the ragged tail once and fold it into lane 0 of the partials.
        tail_sum = jnp.sum(x[:, :, n_groups * _LANES:], axis=-1, keepdims=True)
        lane = jax.lax.broadcasted_iota(jnp.int32, part.shape, 2)
        part = part + jnp.where(lane == 0, tail_sum, 0.0)
    acc_ref[...] = part

    @pl.when(k == pl.num_programs(1) - 1)
    def _epilogue():
        # Single 128->1 reduce, GAP mean scale, tiny matmul, bias.
        s = jnp.sum(acc_ref[...], axis=-1) * inv_hw                 # (TB, C)
        y = jnp.dot(s, w_ref[...], preferred_element_type=jnp.float32)
        o_ref[...] = (y + b_ref[...]).astype(o_ref.dtype)


def _vmem_limit_bytes():
    """Generation-aware VMEM limit: half of physical, clamped to [32, 64] MiB."""
    cap = 128 << 20
    try:
        cap = int(getattr(pltpu.get_tpu_info(), "vmem_capacity_bytes", cap))
    except Exception:
        pass
    return int(min(64 << 20, max(32 << 20, cap // 2)))


def prepare_classifier_params(weight, bias):
    """Call-once weight/bias prep: transpose + pad num_classes to 128 lanes."""
    num_classes, in_channels = weight.shape
    n_pad = max(_LANES, ((num_classes + _LANES - 1) // _LANES) * _LANES)
    w_pad = jnp.zeros((in_channels, n_pad), jnp.float32)
    w_pad = w_pad.at[:, :num_classes].set(weight.T.astype(jnp.float32))
    b_pad = jnp.zeros((1, n_pad), jnp.float32)
    b_pad = b_pad.at[0, :num_classes].set(bias.astype(jnp.float32))
    return w_pad, b_pad, num_classes


def classifier_forward_prepared(x_nchw, w_pad, b_pad, num_classes, *,
                                spatial_tile=None):
    """x_nchw: (B, C, H, W); w_pad: (C, N_pad); b_pad: (1, N_pad) -> (B, N)."""
    B, C, H, W = x_nchw.shape
    HW = H * W
    N_pad = w_pad.shape[1]
    item = jnp.dtype(x_nchw.dtype).itemsize
    vmem_limit = _vmem_limit_bytes()

    # --- batch tile (output block's 2nd-to-last dim: multiple of 8 or == B) --
    Bp = B if B <= 8 else ((B + 7) // 8) * 8
    tb_cands = [t for t in (64, 32, 16, 8) if Bp % t == 0] or [Bp]

    def fixed_bytes(tb):
        return (2 * C * N_pad * 4           # weight (double-buffered)
                + 2 * N_pad * 4             # bias
                + tb * C * _LANES * 4       # lane-partial accumulator scratch
                + 2 * tb * N_pad * item)    # output block

    def act_budget(tb):
        return vmem_limit - fixed_bytes(tb) - (1 << 20)

    def fits_full(tb):
        return HW <= _MAX_BLOCK_LANES and 2 * tb * C * HW * item <= act_budget(tb)

    TB = None
    for t in tb_cands:           # prefer: >=2 parallel steps AND full-extent HW
        if Bp // t >= 2 and fits_full(t):
            TB = t
            break
    if TB is None:
        for t in tb_cands:       # else: at least >=2 parallel steps (v7x megacore)
            if Bp // t >= 2:
                TB = t
                break
    if TB is None:               # single parallel step unavoidable (Bp <= 8)
        TB = tb_cands[-1]

    # --- spatial tile ---------------------------------------------------------
    if spatial_tile is not None:                    # testing / manual override
        t_hw = min(max(_LANES, (int(spatial_tile) // _LANES) * _LANES),
                   _MAX_BLOCK_LANES)
        hw_pad = ((HW + t_hw - 1) // t_hw) * t_hw
    elif fits_full(TB):
        # Full-extent last block dim: legal (equals array dim), no activation
        # padding, one contiguous HBM DMA per batch tile.
        t_hw, hw_pad = HW, HW
    else:
        per_buf = max(act_budget(TB) // 2, TB * C * _LANES * item)
        t_hw = max(_LANES, min(per_buf // (TB * C * item), _MAX_BLOCK_LANES))
        t_hw = (t_hw // _LANES) * _LANES
        t_hw = min(t_hw, ((HW + _LANES - 1) // _LANES) * _LANES)
        hw_pad = ((HW + t_hw - 1) // t_hw) * t_hw
    grid = (Bp // TB, hw_pad // t_hw)

    # --- wrapper-side reshape / (rare) zero padding ---------------------------
    x_flat = x_nchw.reshape(B, C, HW)
    if Bp != B:
        x_flat = jnp.pad(x_flat, ((0, Bp - B), (0, 0), (0, 0)))
    if hw_pad != HW:
        # Zero pad contributes nothing to the sum; the true 1/HW is in-kernel.
        x_flat = jnp.pad(x_flat, ((0, 0), (0, 0), (0, hw_pad - HW)))

    kernel = functools.partial(_classifier_kernel, inv_hw=1.0 / float(HW))

    cost = pl.CostEstimate(
        flops=int(B) * int(C) * int(HW) + 2 * int(B) * int(C) * int(N_pad),
        transcendentals=0,
        bytes_accessed=int(Bp * C * hw_pad * item + C * N_pad * 4
                           + N_pad * 4 + Bp * N_pad * item),
    )

    needed = fixed_bytes(TB) + 2 * TB * C * t_hw * item + (2 << 20)
    vmem_limit = int(min(128 << 20, max(vmem_limit, needed)))

    out = pl.pallas_call(
        kernel,
        out_shape=jax.ShapeDtypeStruct((Bp, N_pad), x_nchw.dtype),
        grid_spec=pltpu.PrefetchScalarGridSpec(
            num_scalar_prefetch=0,
            grid=grid,
            in_specs=[
                pl.BlockSpec((TB, C, t_hw), lambda i, k: (i, 0, k)),
                pl.BlockSpec((C, N_pad), lambda i, k: (0, 0)),
                pl.BlockSpec((1, N_pad), lambda i, k: (0, 0)),
            ],
            out_specs=pl.BlockSpec((TB, N_pad), lambda i, k: (i, 0)),
            scratch_shapes=[pltpu.VMEM((TB, C, _LANES), jnp.float32)],
        ),
        compiler_params=pltpu.CompilerParams(
            dimension_semantics=("parallel", "arbitrary"),
            vmem_limit_bytes=vmem_limit,
        ),
        cost_estimate=cost,
    )(x_flat, w_pad, b_pad)

    return out[:B, :num_classes]


def classifier_forward(x_nchw, weight, bias):
    """Convenience wrapper: prep params (ideally done once) + forward."""
    w_pad, b_pad, n = prepare_classifier_params(weight, bias)
    return classifier_forward_prepared(x_nchw, w_pad, b_pad, n)


def init_classifier_params(key, in_channels, num_classes=1, dtype=jnp.float32):
    # Matches nn.Linear default init: U(-1/sqrt(in), 1/sqrt(in)) for W and b.
    kw, kb = jax.random.split(key)
    bound = 1.0 / jnp.sqrt(jnp.asarray(in_channels, jnp.float32))
    weight = jax.random.uniform(kw, (num_classes, in_channels), dtype,
                                minval=-bound, maxval=bound)
    bias = jax.random.uniform(kb, (num_classes,), dtype,
                              minval=-bound, maxval=bound)
    return weight, bias


def _ref(x, weight, bias):
    return jnp.mean(x, axis=(2, 3)) @ weight.T + bias


if __name__ == "__main__":
    key = jax.random.PRNGKey(0)
    k1, k2, k3, k4, k5, k6 = jax.random.split(key, 6)

    # Case 1: spec-sized small input; full-extent HW block (HW % 128 == 0).
    B, C, H, W, N = 2, 4, 16, 16, 1
    x = jax.random.normal(k1, (B, C, H, W), jnp.float32)
    weight, bias = init_classifier_params(k2, C, N)
    out = jax.block_until_ready(classifier_forward(x, weight, bias))
    ref = _ref(x, weight, bias)
    assert out.shape == (B, N)
    assert jnp.allclose(out, ref, atol=1e-5, rtol=1e-5)

    # Case 2: batch tiling (2 parallel steps), full-extent ragged HW (24*24=576,
    # not a multiple of 128 -> exercises the lane-tail path), N padding.
    B2, C2, H2, W2, N2 = 16, 8, 24, 24, 3
    x2 = jax.random.normal(k3, (B2, C2, H2, W2), jnp.float32)
    w2, b2 = init_classifier_params(k4, C2, N2)
    out2 = jax.block_until_ready(classifier_forward(x2, w2, b2))
    ref2 = _ref(x2, w2, b2)
    assert out2.shape == (B2, N2)
    assert jnp.allclose(out2, ref2, atol=1e-5, rtol=1e-5)

    # Case 3: force the tiled multi-step HW path (spatial_tile=128 -> 4 steps,
    # HW zero-padded to a multiple of the chosen tile) with prepared params.
    B3, C3, H3, W3, N3 = 8, 16, 20, 20, 5
    x3 = jax.random.normal(k5, (B3, C3, H3, W3), jnp.float32)
    w3, b3 = init_classifier_params(k6, C3, N3)
    w3p, b3p, n3 = prepare_classifier_params(w3, b3)
    out3 = jax.block_until_ready(
        classifier_forward_prepared(x3, w3p, b3p, n3, spatial_tile=128))
    ref3 = _ref(x3, w3, b3)
    assert out3.shape == (B3, N3)
    assert jnp.allclose(out3, ref3, atol=1e-5, rtol=1e-5)

    print("KERNEL_OK")
</pallas_src>

<mosaic_0001>
module attributes {stable_mosaic.version = 11 : i64} {
  func.func @_classifier_kernel(%arg0: i32, %arg1: i32, %arg2: memref<2x4x256xf32, #tpu.memory_space<vmem>>, %arg3: memref<4x128xf32, #tpu.memory_space<vmem>>, %arg4: memref<1x128xf32, #tpu.memory_space<vmem>>, %arg5: memref<2x128xf32, #tpu.memory_space<vmem>>, %arg6: memref<2x4x128xf32, #tpu.memory_space<vmem>>) attributes {dimension_semantics = [#tpu.dimension_semantics<parallel>, #tpu.dimension_semantics<arbitrary>], iteration_bounds = array<i64: 1, 1>, scalar_prefetch = 0 : i64, scratch_operands = 1 : i64, tpu.core_type = #tpu.core_type<tc>, window_params = [{transform_indices = @transform_0, window_bounds = array<i64: 2, 4, 256>}, {pipeline_mode = #tpu.pipeline_mode<synchronous>, transform_indices = @transform_1, window_bounds = array<i64: 4, 128>}, {pipeline_mode = #tpu.pipeline_mode<synchronous>, transform_indices = @transform_2, window_bounds = array<i64: 1, 128>}, {transform_indices = @transform_3, window_bounds = array<i64: 2, 128>}]} {
    %c0_i32 = arith.constant 0 : i32
    %0 = arith.cmpi eq, %arg1, %c0_i32 : i32
    %1 = arith.extui %0 : i1 to i32
    %c0_i32_0 = arith.constant 0 : i32
    %2 = arith.cmpi ne, %1, %c0_i32_0 : i32
    scf.if %2 {
      %cst = arith.constant 0.000000e+00 : f32
      %13 = vector.broadcast %cst : f32 to vector<2x4x128xf32>
      %c0_11 = arith.constant 0 : index
      %c0_12 = arith.constant 0 : index
      %c0_13 = arith.constant 0 : index
      %14 = vector.load %arg6[%c0_11, %c0_12, %c0_13] : memref<2x4x128xf32, #tpu.memory_space<vmem>>, vector<2x4x128xf32>
      tpu.vector_store %arg6[%c0_11, %c0_12, %c0_13], %13 {strides = array<i32>} : memref<2x4x128xf32, #tpu.memory_space<vmem>>, vector<2x4x128xf32>,
    } else {
    }
    %c0 = arith.constant 0 : index
    %c0_1 = arith.constant 0 : index
    %c0_2 = arith.constant 0 : index
    %3 = vector.load %arg2[%c0, %c0_1, %c0_2] : memref<2x4x256xf32, #tpu.memory_space<vmem>>, vector<2x4x256xf32>
    %c0_3 = arith.constant 0 : index
    %c0_4 = arith.constant 0 : index
    %c0_5 = arith.constant 0 : index
    %4 = vector.load %arg6[%c0_3, %c0_4, %c0_5] : memref<2x4x128xf32, #tpu.memory_space<vmem>>, vector<2x4x128xf32>
    %5 = vector.extract_strided_slice %3 {offsets = [0, 0, 0], sizes = [2, 4, 128], strides = [1, 1, 1]} : vector<2x4x256xf32> to vector<2x4x128xf32>
    %6 = arith.addf %4, %5 : vector<2x4x128xf32>
    %7 = vector.extract_strided_slice %3 {offsets = [0, 0, 128], sizes = [2, 4, 128], strides = [1, 1, 1]} : vector<2x4x256xf32> to vector<2x4x128xf32>
    %8 = arith.addf %6, %7 : vector<2x4x128xf32>
    %c0_6 = arith.constant 0 : index
    %c0_7 = arith.constant 0 : index
    %c0_8 = arith.constant 0 : index
    %9 = vector.load %arg6[%c0_6, %c0_7, %c0_8] : memref<2x4x128xf32, #tpu.memory_space<vmem>>, vector<2x4x128xf32>
    tpu.vector_store %arg6[%c0_6, %c0_7, %c0_8], %8 {strides = array<i32>} : memref<2x4x128xf32, #tpu.memory_space<vmem>>, vector<2x4x128xf32>,
    %c0_i32_9 = arith.constant 0 : i32
    %10 = arith.cmpi eq, %arg1, %c0_i32_9 : i32
    %11 = arith.extui %10 : i1 to i32
    %c0_i32_10 = arith.constant 0 : i32
    %12 = arith.cmpi ne, %11, %c0_i32_10 : i32
    scf.if %12 {
      %c0_11 = arith.constant 0 : index
      %c0_12 = arith.constant 0 : index
      %c0_13 = arith.constant 0 : index
      %13 = vector.load %arg6[%c0_11, %c0_12, %c0_13] : memref<2x4x128xf32, #tpu.memory_space<vmem>>, vector<2x4x128xf32>
      %cst = arith.constant dense<0.000000e+00> : vector<2x4xf32>
      %14 = vector.multi_reduction <add>, %13, %cst [2] : vector<2x4x128xf32> to vector<2x4xf32>
      %cst_14 = arith.constant 3.906250e-03 : f32
      %15 = vector.broadcast %cst_14 : f32 to vector<2x4xf32>
      %16 = arith.mulf %14, %15 : vector<2x4xf32>
      %c0_15 = arith.constant 0 : index
      %c0_16 = arith.constant 0 : index
      %17 = vector.load %arg3[%c0_15, %c0_16] : memref<4x128xf32, #tpu.memory_space<vmem>>, vector<4x128xf32>
      %cst_17 = arith.constant dense<0.000000e+00> : vector<2x128xf32>
      %18 = tpu.matmul %16, %17, %cst_17 {dimension_numbers = #tpu.dot_dimension_numbers<[1], [0], [0], [1], [0, 0, 1, 1], [], []>} : vector<2x4xf32>, vector<4x128xf32>, vector<2x128xf32> -> vector<2x128xf32>
      %c0_18 = arith.constant 0 : index
      %c0_19 = arith.constant 0 : index
      %19 = vector.load %arg4[%c0_18, %c0_19] : memref<1x128xf32, #tpu.memory_space<vmem>>, vector<1x128xf32>
      %20 = vector.broadcast %19 : vector<1x128xf32> to vector<2x128xf32>
      %21 = arith.addf %18, %20 : vector<2x128xf32>
      %c0_20 = arith.constant 0 : index
      %c0_21 = arith.constant 0 : index
      %22 = vector.load %arg5[%c0_20, %c0_21] : memref<2x128xf32, #tpu.memory_space<vmem>>, vector<2x128xf32>
      tpu.vector_store %arg5[%c0_20, %c0_21], %21 {strides = array<i32>} : memref<2x128xf32, #tpu.memory_space<vmem>>, vector<2x128xf32>,
    } else {
    }
    return
  }
  func.func @transform_0(%arg0: i32, %arg1: i32) -> (i32, i32, i32) {
    %c0_i32 = arith.constant 0 : i32
    %c0_i32_0 = arith.constant 0 : i32
    return %arg0, %c0_i32, %arg1 : i32, i32, i32
  }
  func.func @transform_1(%arg0: i32, %arg1: i32) -> (i32, i32) {
    %c0_i32 = arith.constant 0 : i32
    %c0_i32_0 = arith.constant 0 : i32
    %c0_i32_1 = arith.constant 0 : i32
    return %c0_i32, %c0_i32_0 : i32, i32
  }
  func.func @transform_2(%arg0: i32, %arg1: i32) -> (i32, i32) {
    %c0_i32 = arith.constant 0 : i32
    %c0_i32_0 = arith.constant 0 : i32
    %c0_i32_1 = arith.constant 0 : i32
    return %c0_i32, %c0_i32_0 : i32, i32
  }
  func.func @transform_3(%arg0: i32, %arg1: i32) -> (i32, i32) {
    %c0_i32 = arith.constant 0 : i32
    %c0_i32_0 = arith.constant 0 : i32
    return %arg0, %c0_i32 : i32, i32
  }
}

</mosaic_0001>

<bundles_post_ra>
// kernel: tpu_custom_call.1
= control target key start
LH: loop header
LB: loop body
LE: loop exit
PB: predicated region body
PF: predicated region fallthrough
CT: control target
= control target key end

     0   :  { %8 = vsyncpa [#allocation4], 0  ;;  %s316_s0 = inlined_call_operand.hbm [shape: f32[2,4,256], index: 0, kind: input, shape index: {}]   ;;  %s317_s1 = inlined_call_operand.hbm [shape: f32[4,128], index: 1, kind: input, shape index: {}]   ;;  %s318_s2 = inlined_call_operand.vmem [shape: f32[1,128], index: 2, kind: input, shape index: {}]   ;;  %s319_s3 = inlined_call_operand.hbm [shape: f32[2,128], index: 3, kind: output, shape index: {}]  }
   0x1   :  { %9 = vsyncpa [#allocation7], 0 }
   0x2   :  { %10 = vsyncpa [#allocation5], 0  ;;  %s277_s12 = smov [#allocation3]  }
   0x3   :  { %s16_s13 = sshll.u32 %s277_s12, 4  ;;  %s17_s13 = int_to_ptr.vmem [resolvable:$true] %s16_s13 }
   0x4   :  { %s219_s14 = scalar_lea.vmem %s17_s13, 256  ;;  %p224_p1 = scmp.lt.s32.totalorder %s17_s13, %s17_s13 }
   0x5   :  { %p220_p0 = scmp.ne.s32.totalorder %s17_s13, %s219_s14  ;;  %p225_p2 = scmp.lt.s32.totalorder %s219_s14, %s219_s14 }
   0x7   :  { %p226_p3 = por %p225_p2, %p224_p1 }
   0x9   :  { %p227_p4 = pnand %p226_p3, %p220_p0 }
   0xb   :  { %230 = shalt.err (!%p227_p4)
}
   0xc   :  { %s278_s15 = smov 128   ;;  %s279_s16 = smov 8  }
   0xd   :  { %22 = dma.hbm_to_vmem [thread:$0]  %s316_s0, 256, %s17_s13, [#allocation4], %s278_s15, %s278_s15, %s279_s16  }
   0xe   :  { %s280_s19 = smov [#allocation6]  }
   0xf   :  { %s29_s20 = sshll.u32 %s280_s19, 4  ;;  %s30_s20 = int_to_ptr.vmem [resolvable:$true] %s29_s20 }
  0x10   :  { %s239_s21 = scalar_lea.vmem %s30_s20, 64  ;;  %p244_p6 = scmp.lt.s32.totalorder %s30_s20, %s30_s20 }
  0x11   :  { %p240_p5 = scmp.ne.s32.totalorder %s30_s20, %s239_s21  ;;  %p245_p7 = scmp.lt.s32.totalorder %s239_s21, %s239_s21 }
  0x13   :  { %p246_p8 = por %p245_p7, %p244_p6 }
  0x15   :  { %p247_p9 = pnand %p246_p8, %p240_p5 }
  0x17   :  { %250 = shalt.err (!%p247_p9)
}
  0x18   :  { %32 = dma.hbm_to_vmem [thread:$0]  %s317_s1, 64, %s30_s20, [#allocation7]  }
  0x19   :  { %271 = dma.done.wait [#allocation4], 256  }
  0x1a   :  { %272 = vsyncadd [#allocation4], 4294967040 }
  0x1b   :  { %273 = dma.done.wait [#allocation7], 64  }
  0x1c   :  { %274 = vsyncadd [#allocation7], 4294967232  ;;  %v281_v0 = vmov 0.0   ;;  %v47_v1 = vld [vmem:[#allocation3] sm:$0xff]  ;;  %v48_v2 = vld [vmem:[#allocation3 + $0x8] sm:$0xff]  ;;  %vm68_vm0 = vcmask 1043456   ;;  %v87_v16 = vlaneseq }
  0x1d   :  { %45 = vst [vmem:[#allocation2] sm:$0xf] %v281_v0  ;;  %46 = vst [vmem:[#allocation2 + $0x4] sm:$0xf] %v281_v0  ;;  %197 = vmatprep.subr.mxu0 %v281_v0  ;;  %v55_v4 = vcombine.high %v47_v1, %v47_v1  ;;  %v56_v6 = vcombine.high %v48_v2, %v48_v2  ;;  %v77_v15 = vld [vmem:[#allocation6] sm:$0xf] }
  0x1e   :  { %198 = vmatpush3.msk.msra.mxu0 %vm68_vm0, %v77_v15  ;;  %vm282_vm1 = vmmov 0   ;;  %v88_v17 = vand.u32 127, %v87_v16  ;;  %v90_v18 = vshrl.u32 %v87_v16, 7  ;;  %vm97_vm2 = vcmask 1041409   ;;  %v192_v27 = vld [vmem:[%s318_s2] ss:$0 sm:$0xff] }
  0x1f   :  { %199 = vmatprep.mubr.msk.f32.mxu0 %vm282_vm1, %v281_v0  ;;  %vm99_vm3 = vcmask 31744   ;;  %s283_s24 = smov [#allocation8]  }
  0x20   :  { %v91_v20 = vsub.s32 %v88_v17, %v90_v18  ;;  %s182_s25 = sshll.u32 %s283_s24, 4  ;;  %s183_s25 = int_to_ptr.vmem [resolvable:$true] %s182_s25 }
  0x21   :  { %s251_s26 = scalar_lea.vmem %s183_s25, 32  ;;  %p256_p11 = scmp.lt.s32.totalorder %s183_s25, %s183_s25 }
  0x22   :  { %p252_p10 = scmp.ne.s32.totalorder %s183_s25, %s251_s26  ;;  %p257_p12 = scmp.lt.s32.totalorder %s251_s26, %s251_s26 }
  0x24   :  { %v49_v3 = vld [vmem:[#allocation2] sm:$0xf]  ;;  %v50_v5 = vld [vmem:[#allocation2 + $0x4] sm:$0xf]  ;;  %p258_p13 = por %p257_p12, %p256_p11 }
  0x25   :  { %v51_v7 = vadd.f32 %v49_v3, %v47_v1  ;;  %v52_v8 = vadd.f32 %v50_v5, %v48_v2 }
  0x26   :  { %p259_p0 = pnand %p258_p13, %p252_p10 }
  0x27   :  { %v59_v9 = vadd.f32 %v55_v4, %v51_v7  ;;  %v60_v10 = vadd.f32 %v56_v6, %v52_v8 }
  0x29   :  { %61 = vst [vmem:[#allocation2] sm:$0xf] %v59_v9  ;;  %62 = vst [vmem:[#allocation2 + $0x4] sm:$0xf] %v60_v10 }
  0x30   :  { %v66_v11 = vld [vmem:[#allocation2] sm:$0xf]  ;;  %v67_v12 = vld [vmem:[#allocation2 + $0x4] sm:$0xf] }
  0x31   :  { %v69_v13 = vsel %vm68_vm0, %v66_v11, 0.0  ;;  %v72_v14 = vsel %vm68_vm0, %v67_v12, 0.0 }
  0x32   :  { %70 = vadd.xlane.f32.xlu0 %v69_v13 }
  0x36   :  { %73 = vadd.xlane.f32.xlu0 %v72_v14 }
  0xbb   :  { %v71_v19 = vpop.xlane.xlu0 %70 }
  0xbc   :  { %v75_v21 = vmul.f32 0.00390625, %v71_v19 }
  0xbe   :  { %v92_v24 = vrot.slane %v75_v21, %v91_v20 }
  0xbf   :  { %v74_v22 = vpop.xlane.xlu0 %73 }
  0xc0   :  { %v76_v23 = vmul.f32 0.00390625, %v74_v22 }
  0xc2   :  { %v96_v25 = vrot.slane %v76_v23, %v91_v20 }
  0xc4   :  { %v98_v26 = vsel %vm97_vm2, %v96_v25, %v92_v24 }
  0xc5   :  { %200 = vmatmul.mubr.msk.f32.vlgmr.msra.gmra.mxu0 %vm99_vm3, %v98_v26 }
 0x185   :  { %v171_v28 = vpop.f32.mrf.mxu0 }
 0x186   :  { %v172_v29 = vadd.f32 %v192_v27, %v171_v28 }
 0x187   :  { %v201_v30 = vpop.f32.mrf.mxu0 }
 0x188   :  { %175 = vst [vmem:[#allocation8] sm:$0x3] %v172_v29 }
 0x189   :  { %262 = shalt.err (!%p259_p0)
}
 0x18a   :  { %185 = dma.vmem_to_hbm [thread:$0]  %s183_s25, 32, %s319_s3, [#allocation5]  }
 0x18b   :  { %275 = dma.done.wait [#allocation5], 32  }
 0x18c   :  { %276 = vsyncadd [#allocation5], 4294967264 }
 0x18d   :  { %189 = vsyncpa [#allocation4], 1 }
 0x18e   :  { %190 = vsyncpa [#allocation7], 1 }
 0x18f   :  { %191 = vsyncpa [#allocation5], 1 }

</bundles_post_ra>
